<compile_context>
chip_gen: v5e
topology: v5e:2x2
jax: 0.10.0
libtpu: 0.0.40
codegen_flags: <defaults>
</compile_context>

<pallas_src>
import functools

import jax
import jax.numpy as jnp
from jax.experimental import pallas as pl
from jax.experimental.pallas import tpu as pltpu


def _nce_kernel(logits_ref, labels_ref, partial_ref, *, num_classes,
                total_rows, tile_rows):
    """One row-tile: sum over valid rows of (logsumexp - picked_logit)."""
    logits = logits_ref[...].astype(jnp.float32)   # (T, C) in VMEM
    labels = labels_ref[...]                       # (T, 1) int32 in VMEM

    # Numerically stable log-sum-exp over the class axis.
    m = jnp.max(logits, axis=-1, keepdims=True)                               # (T, 1)
    lse = m + jnp.log(jnp.sum(jnp.exp(logits - m), axis=-1, keepdims=True))   # (T, 1)

    # Gather the logit at the label index via a one-hot mask (vectorized;
    # avoids per-row dynamic gather).  Single iota for the whole tile.
    class_ids = jax.lax.broadcasted_iota(jnp.int32, (tile_rows, num_classes), 1)
    one_hot = class_ids == labels                                             # (T, C)
    picked = jnp.sum(jnp.where(one_hot, logits, 0.0), axis=-1, keepdims=True)  # (T, 1)

    # Mask out padded rows (global row id >= total_rows).
    row_ids = (jax.lax.broadcasted_iota(jnp.int32, (tile_rows, 1), 0)
               + pl.program_id(0) * tile_rows)
    valid = row_ids < total_rows
    contrib = jnp.where(valid, lse - picked, 0.0)                             # (T, 1)

    # One partial sum per grid step (scalar, SMEM).  Final sum / B is done
    # outside the kernel so the grid axis stays fully parallel.
    partial_ref[0, 0] = jnp.sum(contrib)


def ncross_entropy_loss(output, label, *, n=4, num_classes=10, tile_rows=1024):
    """Pallas equivalent of nCrossEntropyLoss(n).forward(output, label)."""
    B = output.shape[0]
    assert output.ndim == 2 and output.shape[1] == n * num_classes
    assert label.shape == (B, n)

    # Free row-major metadata reshapes: digit i of row b -> flat row b*n + i.
    logits = output.reshape(B * n, num_classes)
    labels = label.astype(jnp.int32).reshape(B * n, 1)  # mirrors label.long()

    R = B * n
    if R >= tile_rows:
        tile_r = tile_rows                 # multiple of 8
    else:
        tile_r = ((R + 7) // 8) * 8        # single tile, sublane-aligned
    num_tiles = pl.cdiv(R, tile_r)
    R_pad = num_tiles * tile_r
    if R_pad != R:
        logits = jnp.pad(logits, ((0, R_pad - R), (0, 0)))
        labels = jnp.pad(labels, ((0, R_pad - R), (0, 0)))

    kernel = functools.partial(_nce_kernel, num_classes=num_classes,
                               total_rows=R, tile_rows=tile_r)

    logit_bytes = R_pad * num_classes * jnp.dtype(logits.dtype).itemsize
    cost = pl.CostEstimate(
        flops=6 * R_pad * num_classes,
        transcendentals=R_pad * (num_classes + 1),
        bytes_accessed=logit_bytes + R_pad * 4 + num_tiles * 4,
    )

    partials = pl.pallas_call(
        kernel,
        out_shape=jax.ShapeDtypeStruct((num_tiles, 1), jnp.float32),
        grid=(num_tiles,),
        in_specs=[
            pl.BlockSpec((tile_r, num_classes), lambda i: (i, 0)),  # logits tile
            pl.BlockSpec((tile_r, 1), lambda i: (i, 0)),            # labels tile
        ],
        out_specs=pl.BlockSpec((1, 1), lambda i: (i, 0),
                               memory_space=pltpu.SMEM),
        compiler_params=pltpu.CompilerParams(
            dimension_semantics=("parallel",)),
        cost_estimate=cost,
    )(logits, labels)

    # sum over all digits and rows, divided by the true batch size once
    # == sum_i mean_b CE_i  (exactly matches torch's mean reduction).
    return jnp.sum(partials) / jnp.float32(B)


def _reference_loss(output, label, n, num_classes):
    """Pure-JAX reference: sum of mean-reduced softmax cross-entropies."""
    out_f = output.astype(jnp.float32)
    lab = label.astype(jnp.int32)
    total = jnp.float32(0.0)
    for i in range(n):
        lg = out_f[:, num_classes * i:num_classes * i + num_classes]
        ls = jax.nn.log_softmax(lg, axis=-1)
        total = total + jnp.mean(
            -jnp.take_along_axis(ls, lab[:, i:i + 1], axis=-1)[:, 0])
    return total


if __name__ == "__main__":
    key = jax.random.PRNGKey(0)
    N_DIGITS, N_CLASSES = 4, 10

    # Case 1: small batch, single tile.
    k1, k2, k3, k4 = jax.random.split(key, 4)
    B1 = 8
    out1 = jax.random.normal(k1, (B1, N_DIGITS * N_CLASSES), dtype=jnp.float32)
    lab1 = jax.random.randint(k2, (B1, N_DIGITS), 0, N_CLASSES, dtype=jnp.int32)
    loss1 = jax.block_until_ready(
        ncross_entropy_loss(out1, lab1, n=N_DIGITS, num_classes=N_CLASSES))
    ref1 = _reference_loss(out1, lab1, N_DIGITS, N_CLASSES)
    assert jnp.allclose(loss1, ref1, rtol=1e-5, atol=1e-5), (loss1, ref1)

    # Case 2: multi-tile grid with padding/masking exercised (B*n=400, tile=256).
    B2 = 100
    out2 = jax.random.normal(k3, (B2, N_DIGITS * N_CLASSES), dtype=jnp.float32)
    lab2 = jax.random.randint(k4, (B2, N_DIGITS), 0, N_CLASSES, dtype=jnp.int32)
    loss2 = jax.block_until_ready(
        ncross_entropy_loss(out2, lab2, n=N_DIGITS, num_classes=N_CLASSES,
                            tile_rows=256))
    ref2 = _reference_loss(out2, lab2, N_DIGITS, N_CLASSES)
    assert jnp.allclose(loss2, ref2, rtol=1e-5, atol=1e-5), (loss2, ref2)

    print("KERNEL_OK")
</pallas_src>

<mosaic_0001>
module attributes {stable_mosaic.version = 11 : i64} {
  func.func @_nce_kernel(%arg0: i32, %arg1: memref<32x10xf32, #tpu.memory_space<vmem>>, %arg2: memref<32x1xi32, #tpu.memory_space<vmem>>, %arg3: memref<1x1xf32, #tpu.memory_space<smem>>) attributes {dimension_semantics = [#tpu.dimension_semantics<parallel>], iteration_bounds = array<i64: 1>, scalar_prefetch = 0 : i64, scratch_operands = 0 : i64, tpu.core_type = #tpu.core_type<tc>, window_params = [{transform_indices = @transform_0, window_bounds = array<i64: 32, 10>}, {transform_indices = @transform_1, window_bounds = array<i64: 32, 1>}, {transform_indices = @transform_2, window_bounds = array<i64: 1, 1>}]} {
    %c0 = arith.constant 0 : index
    %c0_0 = arith.constant 0 : index
    %0 = vector.load %arg1[%c0, %c0_0] : memref<32x10xf32, #tpu.memory_space<vmem>>, vector<32x10xf32>
    %c0_1 = arith.constant 0 : index
    %c0_2 = arith.constant 0 : index
    %1 = vector.load %arg2[%c0_1, %c0_2] : memref<32x1xi32, #tpu.memory_space<vmem>>, vector<32x1xi32>
    %cst = arith.constant dense<0xFF800000> : vector<32xf32>
    %2 = vector.multi_reduction <maximumf>, %0, %cst [1] : vector<32x10xf32> to vector<32xf32>
    %3 = vector.shape_cast %2 : vector<32xf32> to vector<32x1xf32>
    %4 = vector.broadcast %3 : vector<32x1xf32> to vector<32x10xf32>
    %5 = arith.subf %0, %4 : vector<32x10xf32>
    %6 = math.exp %5 : vector<32x10xf32>
    %cst_3 = arith.constant dense<0.000000e+00> : vector<32xf32>
    %7 = vector.multi_reduction <add>, %6, %cst_3 [1] : vector<32x10xf32> to vector<32xf32>
    %8 = vector.shape_cast %7 : vector<32xf32> to vector<32x1xf32>
    %9 = math.log %8 : vector<32x1xf32>
    %10 = arith.addf %3, %9 : vector<32x1xf32>
    %11 = tpu.iota {dimensions = array<i32: 1>} : vector<32x10xi32>
    %12 = vector.broadcast %1 : vector<32x1xi32> to vector<32x10xi32>
    %13 = arith.cmpi eq, %11, %12 : vector<32x10xi32>
    %cst_4 = arith.constant 0.000000e+00 : f32
    %14 = vector.broadcast %cst_4 : f32 to vector<32x10xf32>
    %15 = arith.select %13, %0, %14 : vector<32x10xi1>, vector<32x10xf32>
    %cst_5 = arith.constant dense<0.000000e+00> : vector<32xf32>
    %16 = vector.multi_reduction <add>, %15, %cst_5 [1] : vector<32x10xf32> to vector<32xf32>
    %17 = vector.shape_cast %16 : vector<32xf32> to vector<32x1xf32>
    %18 = tpu.iota {dimensions = array<i32: 0>} : vector<32x1xi32>
    %c32_i32 = arith.constant 32 : i32
    %19 = arith.muli %arg0, %c32_i32 : i32
    %20 = vector.broadcast %19 : i32 to vector<32x1xi32>
    %21 = arith.addi %18, %20 : vector<32x1xi32>
    %c32_i32_6 = arith.constant 32 : i32
    %22 = vector.broadcast %c32_i32_6 : i32 to vector<32x1xi32>
    %23 = arith.cmpi slt, %21, %22 : vector<32x1xi32>
    %24 = arith.subf %10, %17 : vector<32x1xf32>
    %cst_7 = arith.constant 0.000000e+00 : f32
    %25 = vector.broadcast %cst_7 : f32 to vector<32x1xf32>
    %26 = arith.select %23, %24, %25 : vector<32x1xi1>, vector<32x1xf32>
    %27 = vector.shape_cast %26 : vector<32x1xf32> to vector<1x32x1xf32>
    %cst_8 = arith.constant dense<0.000000e+00> : vector<1xf32>
    %28 = vector.multi_reduction <add>, %27, %cst_8 [1, 2] : vector<1x32x1xf32> to vector<1xf32>
    %29 = vector.shape_cast %28 : vector<1xf32> to vector<1x1x1xf32>
    %30 = vector.extract %29[0, 0, 0] : f32 from vector<1x1x1xf32>
    %c0_9 = arith.constant 0 : index
    %c0_10 = arith.constant 0 : index
    %31 = memref.load %arg3[%c0_9, %c0_10] : memref<1x1xf32, #tpu.memory_space<smem>>
    memref.store %30, %arg3[%c0_9, %c0_10] : memref<1x1xf32, #tpu.memory_space<smem>>
    return
  }
  func.func @transform_0(%arg0: i32) -> (i32, i32) {
    %c0_i32 = arith.constant 0 : i32
    %c0_i32_0 = arith.constant 0 : i32
    return %arg0, %c0_i32 : i32, i32
  }
  func.func @transform_1(%arg0: i32) -> (i32, i32) {
    %c0_i32 = arith.constant 0 : i32
    %c0_i32_0 = arith.constant 0 : i32
    return %arg0, %c0_i32 : i32, i32
  }
  func.func @transform_2(%arg0: i32) -> (i32, i32) {
    %c0_i32 = arith.constant 0 : i32
    %c0_i32_0 = arith.constant 0 : i32
    return %arg0, %c0_i32 : i32, i32
  }
}

</mosaic_0001>

<bundles_post_ra>
// kernel: tpu_custom_call.1
= control target key start
LH: loop header
LB: loop body
LE: loop exit
PB: predicated region body
PF: predicated region fallthrough
CT: control target
= control target key end

     0   :  { %vm20_vm0 = vcmask 80896   ;;  %v197_v4 = vmov 0   ;;  %s266_s0 = inlined_call_operand.vmem [shape: f32[32,10], index: 0, kind: input, shape index: {}]   ;;  %s267_s1 = inlined_call_operand.vmem [shape: s32[32,1], index: 1, kind: input, shape index: {}]   ;;  %s268_s2 = inlined_call_operand.hbm [shape: f32[1,1], index: 2, kind: output, shape index: {}]  }
   0x1   :  { %v217_v0 = vld [vmem:[%s266_s0 + $0x10] sm:$0xff]  ;;  %v12_v1 = vld [vmem:[%s266_s0] sm:$0xff]  ;;  %164 = vset.pattern.permute.xlu2 %v197_v4  ;;  %166 = vset.pattern.permute.xlu1 %v197_v4 }
   0x2   :  { %v27_v2 = vsel %vm20_vm0, %v217_v0, -inf  ;;  %v21_v3 = vsel %vm20_vm0, %v12_v1, -inf  ;;  %v16_v5 = vld [vmem:[%s267_s1] sm:$0xff] }
   0x3   :  { %28 = vmax.xlane.f32.xlu1 %v27_v2  ;;  %22 = vmax.xlane.f32.xlu0 %v21_v3 }
   0x4   :  { %7 = vsyncpa [#allocation3], 0  ;;  %72 = vperm.xlu2 %164, %v16_v5   ;;  %165 = vset.pattern.permute.xlu0 %v197_v4  ;;  %v13_v6 = vld [vmem:[%s266_s0 + $0x8] sm:$0xff]  ;;  %v15_v7 = vld [vmem:[%s266_s0 + $0x18] sm:$0xff]  ;;  %v69_v19 = vlaneseq  ;;  %vm126_vm5 = vcmask 7168   ;;  %s150_s25 = sshll.u32 %s268_s2, 4  ;;  %s151_s25 = int_to_ptr.hbm [resolvable:$true] %s150_s25 }
   0x5   :  { %v24_v8 = vsel %vm20_vm0, %v13_v6, -inf  ;;  %v30_v9 = vsel %vm20_vm0, %v15_v7, -inf  ;;  %v17_v10 = vld [vmem:[%s267_s1 + $0x8] sm:$0xff]  ;;  %v18_v11 = vld [vmem:[%s267_s1 + $0x10] sm:$0xff]  ;;  %v19_v12 = vld [vmem:[%s267_s1 + $0x18] sm:$0xff]  ;;  %s198_s27 = smov [#allocation2]  }
   0x6   :  { %v70_v23 = vand.u32 127, %v69_v19 }
   0xb   :  { %25 = vmax.xlane.f32.xlu0 %v24_v8  ;;  %31 = vmax.xlane.f32.xlu1 %v30_v9 }
   0xc   :  { %75 = vperm.xlu2 %164, %v17_v10  }
  0x1f   :  { %78 = vperm.xlu0 %165, %v18_v11  }
  0x24   :  { %81 = vperm.xlu1 %166, %v19_v12  }
  0x5e   :  { %v73_v28 = vpop.permute.xlu2 %72 }
  0x5f   :  { %vm83_vm1 = vcmp.eq.s32.totalorder %v70_v23, %v73_v28 }
  0x60   :  { %v87_v32 = vsel %vm83_vm1, %v12_v1, 0.0 }
  0x61   :  { %v91_v34 = vsel %vm20_vm0, %v87_v32, 0.0 }
  0x66   :  { %v76_v38 = vpop.permute.xlu2 %75 }
  0x67   :  { %vm84_vm2 = vcmp.eq.s32.totalorder %v70_v23, %v76_v38 }
  0x68   :  { %v88_v40 = vsel %vm84_vm2, %v13_v6, 0.0 }
  0x69   :  { %v94_v44 = vsel %vm20_vm0, %v88_v40, 0.0 }
  0x76   :  { %v245_v13 = vpop.xlane.xlu1 %28  ;;  %v247_v14 = vpop.xlane.xlu0 %22 }
  0x77   :  { %v35_v15 = vsub.f32 %v217_v0, %v245_v13  ;;  %v33_v16 = vsub.f32 %v12_v1, %v247_v14 }
  0x79   :  { %v41_v17 = vmul.f32 1.442695, %v35_v15  ;;  %v37_v18 = vmul.f32 1.442695, %v33_v16 }
  0x7b   :  { %167 = vpow2.f32 %v41_v17 }
  0x7c   :  { %169 = vpow2.f32 %v37_v18 }
  0x7e   :  { %v26_v20 = vpop.xlane.xlu0 %25  ;;  %v32_v21 = vpop.xlane.xlu1 %31 }
  0x7f   :  { %v34_v22 = vsub.f32 %v13_v6, %v26_v20  ;;  %v36_v24 = vsub.f32 %v15_v7, %v32_v21 }
  0x81   :  { %v168_v25 = vpop.eup %167  ;;  %v39_v26 = vmul.f32 1.442695, %v34_v22  ;;  %v43_v31 = vmul.f32 1.442695, %v36_v24 }
  0x82   :  { %v170_v27 = vpop.eup %169  ;;  %v51_v29 = vsel %vm20_vm0, %v168_v25, 0.0 }
  0x83   :  { %171 = vpow2.f32 %v39_v26  ;;  %52 = vadd.xlane.f32.xlu0 %v51_v29  ;;  %v45_v30 = vsel %vm20_vm0, %v170_v27, 0.0 }
  0x84   :  { %46 = vadd.xlane.f32.xlu2 %v45_v30  ;;  %173 = vpow2.f32 %v43_v31 }
  0x89   :  { %v172_v33 = vpop.eup %171 }
  0x8a   :  { %v48_v35 = vsel %vm20_vm0, %v172_v33, 0.0  ;;  %v174_v36 = vpop.eup %173 }
  0x8b   :  { %49 = vadd.xlane.f32.xlu1 %v48_v35  ;;  %v54_v37 = vsel %vm20_vm0, %v174_v36, 0.0 }
  0x8c   :  { %92 = vadd.xlane.f32.xlu2 %v91_v34 }
  0x91   :  { %v79_v42 = vpop.permute.xlu0 %78 }
  0x92   :  { %vm85_vm4 = vcmp.eq.s32.totalorder %v70_v23, %v79_v42 }
  0x93   :  { %v89_v45 = vsel %vm85_vm4, %v217_v0, 0.0 }
  0x94   :  { %55 = vadd.xlane.f32.xlu2 %v54_v37  ;;  %v97_v46 = vsel %vm20_vm0, %v89_v45, 0.0 }
  0x96   :  { %v82_v39 = vpop.permute.xlu1 %81 }
  0x97   :  { %vm86_vm3 = vcmp.eq.s32.totalorder %v70_v23, %v82_v39 }
  0x98   :  { %v90_v41 = vsel %vm86_vm3, %v15_v7, 0.0 }
  0x99   :  { %v100_v43 = vsel %vm20_vm0, %v90_v41, 0.0 }
  0x9a   :  { %101 = vadd.xlane.f32.xlu1 %v100_v43 }
  0x9c   :  { %95 = vadd.xlane.f32.xlu2 %v94_v44 }
  0xa4   :  { %98 = vadd.xlane.f32.xlu2 %v97_v46 }
  0xf6   :  { %v53_v50 = vpop.xlane.xlu0 %52 }
  0xf7   :  { %v47_v47 = vpop.xlane.xlu2 %46 }
  0xf8   :  { %175 = vlog2.f32 %v47_v47 }
  0xfe   :  { %v50_v49 = vpop.xlane.xlu1 %49  ;;  %v176_v52 = vpop.eup %175 }
  0xff   :  { %v93_v48 = vpop.xlane.xlu2 %92  ;;  %177 = vlog2.f32 %v50_v49  ;;  %v58_v54 = vmul.f32 0.6931472, %v176_v52 }
 0x101   :  { %v65_v59 = vadd.f32 %v58_v54, %v247_v14 }
 0x103   :  { %v118_v0 = vsub.f32 %v65_v59, %v93_v48 }
 0x105   :  { %v178_v53 = vpop.eup %177  ;;  %v127_v6 = vsel %vm126_vm5, %v118_v0, 0.0 }
 0x106   :  { %v60_v55 = vmul.f32 0.6931472, %v178_v53 }
 0x107   :  { %v56_v51 = vpop.xlane.xlu2 %55 }
 0x108   :  { %179 = vlog2.f32 %v56_v51  ;;  %v66_v61 = vadd.f32 %v60_v55, %v26_v20 }
 0x109   :  { %181 = vlog2.f32 %v53_v50 }
 0x10d   :  { %v102_v2 = vpop.xlane.xlu1 %101 }
 0x10e   :  { %v180_v56 = vpop.eup %179 }
 0x10f   :  { %v182_v57 = vpop.eup %181  ;;  %v96_v58 = vpop.xlane.xlu2 %95  ;;  %v64_v60 = vmul.f32 0.6931472, %v180_v56 }
 0x110   :  { %v62_v62 = vmul.f32 0.6931472, %v182_v57  ;;  %v119_v63 = vsub.f32 %v66_v61, %v96_v58 }
 0x111   :  { %v68_v1 = vadd.f32 %v64_v60, %v32_v21 }
 0x112   :  { %v128_v3 = vsel %vm126_vm5, %v119_v63, 0.0  ;;  %v67_v4 = vadd.f32 %v62_v62, %v245_v13 }
 0x113   :  { %v121_v7 = vsub.f32 %v68_v1, %v102_v2  ;;  %v129_v9 = vadd.f32 %v128_v3, %v127_v6 }
 0x115   :  { %v132_v12 = vsel %vm126_vm5, %v121_v7, 0.0 }
 0x117   :  { %v99_v5 = vpop.xlane.xlu2 %98 }
 0x118   :  { %v120_v8 = vsub.f32 %v67_v4, %v99_v5 }
 0x11a   :  { %v130_v10 = vsel %vm126_vm5, %v120_v8, 0.0 }
 0x11b   :  { %v131_v11 = vadd.f32 %v130_v10, %v129_v9 }
 0x11d   :  { %v133_v14 = vadd.f32 %v132_v12, %v131_v11 }
 0x11f   :  { %134 = vadd.xlane.f32.xlu2 %v133_v14 }
 0x192   :  { %v135_v15 = vpop.xlane.xlu2 %134 }
 0x193   :  { %v136_v16 = vrot.slane %v135_v15, 4 }
 0x195   :  { %v137_v17 = vadd.f32 %v136_v16, %v135_v15 }
 0x197   :  { %v138_v18 = vrot.slane %v137_v17, 2 }
 0x199   :  { %v139_v19 = vadd.f32 %v138_v18, %v137_v17 }
 0x19b   :  { %v140_v20 = vrot.slane %v139_v19, 1 }
 0x19d   :  { %v141_v21 = vadd.f32 %v140_v20, %v139_v19 }
 0x19f   :  { %160 = vpush %v141_v21 }
 0x1d0   :  { %s161_s26 = spop %160 }
 0x1d1   :  { %144 = sst [smem:[#allocation2]] %s161_s26 }
 0x1d2   :  { %153 = dma.smem_to_hbm %s198_s27, 16, %s151_s25, [#allocation3]  }
 0x1d3   :  { %195 = dma.done.wait [#allocation3], 16  }
 0x1d4   :  { %196 = vsyncadd [#allocation3], 4294967280 }
 0x1d5   :  { %158 = sfence }
 0x1d6   :  { %159 = vsyncpa [#allocation3], 1 }

</bundles_post_ra>
